<compile_context>
chip_gen: v5e
topology: v5e:2x2
jax: 0.10.0
libtpu: 0.0.40
codegen_flags: <defaults>
</compile_context>

<pallas_src>
import functools

import jax
import jax.numpy as jnp
from jax import lax
from jax.experimental import pallas as pl
from jax.experimental.pallas import tpu as pltpu

_EPS = 1e-6


# ---------------------------------------------------------------------------
# Shared stats finalization (bias fold)
# ---------------------------------------------------------------------------

def _finalize_scale_shift(sum_col, sq_col, b, g, be, inv_n, hw):
    """Fold the conv bias into GroupNorm stats; return fused (scale, shift).

    sum_col/sq_col: (Cout,1) per-channel sums of u = W@x (bias-free conv).
    y = u + b  =>  sum(y)  = sum(u) + HW*sum(b)
                   sum(y^2)= sum(u^2) + 2*sum(b*sum_u_c) + HW*sum(b^2)
    z = (y-mean)*rstd*gamma + beta = u*scale + shift,
        scale = gamma*rstd, shift = beta + (b-mean)*scale.
    """
    sum_y = jnp.sum(sum_col) + hw * jnp.sum(b)
    sumsq_y = jnp.sum(sq_col) + 2.0 * jnp.sum(b * sum_col) + hw * jnp.sum(b * b)
    mean = sum_y * inv_n
    var = sumsq_y * inv_n - mean * mean          # one-pass variance (see header)
    rstd = lax.rsqrt(jnp.maximum(var, 0.0) + _EPS)
    scale = g * rstd                              # (Cout, 1)
    shift = be + (b - mean) * scale               # (Cout, 1)
    return scale, shift


# ---------------------------------------------------------------------------
# Kernels
# ---------------------------------------------------------------------------

def _convnorm_fused_kernel(x_ref, w_ref, b_ref, g_ref, be_ref, alpha_ref, o_ref,
                           *, inv_n, hw):
    """Path A: one whole sample per grid step.

    x_ref: (1, Cin, HW), w_ref: (Cout, Cin), b/g/be: (Cout, 1),
    alpha_ref: (1,) in SMEM, o_ref: (1, Cout, HW).
    """
    u = jnp.dot(w_ref[...], x_ref[0],
                preferred_element_type=jnp.float32)          # (Cout, HW), bias-free
    # Per-channel lane reductions (single traversal of the slab), tiny column
    # reduce happens inside the finalizer.
    s_col = jnp.sum(u, axis=1, keepdims=True)                # (Cout, 1)
    q_col = jnp.sum(u * u, axis=1, keepdims=True)            # (Cout, 1)
    scale, shift = _finalize_scale_shift(s_col, q_col, b_ref[...], g_ref[...],
                                         be_ref[...], inv_n, hw)
    z = u * scale + shift
    alpha = alpha_ref[0]
    o_ref[0] = jnp.where(z >= 0.0, z, alpha * z).astype(o_ref.dtype)


def _convnorm_cache_y_kernel(x_ref, w_ref, b_ref, g_ref, be_ref, alpha_ref, o_ref,
                             sum_ref, sq_ref, *, tile, inv_n, hw):
    """Path B: stream x, cache y inside the VMEM-resident output block.

    grid = (B, n_tiles).  The output BlockSpec index is constant along the
    tile axis, so the whole (Cout, HW) output slab stays in VMEM: each step
    stages the bias-free conv tile into it and accumulates per-channel
    sum/sumsq; the last step normalizes + PReLUs the slab in place.  x is
    read from HBM exactly once and the matmul runs exactly once.
    """
    t = pl.program_id(1)

    u = jnp.dot(w_ref[...], x_ref[0],
                preferred_element_type=jnp.float32)          # (Cout, tile)

    @pl.when(t == 0)
    def _init():
        sum_ref[...] = jnp.zeros_like(sum_ref)
        sq_ref[...] = jnp.zeros_like(sq_ref)

    sum_ref[...] += jnp.sum(u, axis=1, keepdims=True)
    sq_ref[...] += jnp.sum(u * u, axis=1, keepdims=True)

    # Stage the un-normalized conv tile into the resident output block.
    col = pl.multiple_of(t * tile, 128)
    o_ref[0, :, pl.ds(col, tile)] = u.astype(o_ref.dtype)

    @pl.when(t == pl.num_programs(1) - 1)
    def _finalize():
        scale, shift = _finalize_scale_shift(sum_ref[...], sq_ref[...], b_ref[...],
                                             g_ref[...], be_ref[...], inv_n, hw)
        z = o_ref[0].astype(jnp.float32) * scale + shift
        alpha = alpha_ref[0]
        o_ref[0] = jnp.where(z >= 0.0, z, alpha * z).astype(o_ref.dtype)


def _convnorm_two_sweep_kernel(x_ref, w_ref, b_ref, g_ref, be_ref, alpha_ref, o_ref,
                               sum_ref, sq_ref, scale_ref, shift_ref,
                               *, tile, inv_n, hw, ragged):
    """Path C: HW-tiled two-sweep fallback (re-reads x).  grid = (B, 2, n_tiles).

    Sweep s=0: accumulate per-channel sum / sumsq of u = W@x (masked last tile
    when HW is not a multiple of the tile).  Sweep s=1: recompute the conv
    tile and apply the fused (hoisted) scale/shift + PReLU.
    """
    s = pl.program_id(1)
    t = pl.program_id(2)

    u = jnp.dot(w_ref[...], x_ref[0],
                preferred_element_type=jnp.float32)          # (Cout, tile)

    @pl.when(jnp.logical_and(s == 0, t == 0))
    def _init():
        sum_ref[...] = jnp.zeros_like(sum_ref)
        sq_ref[...] = jnp.zeros_like(sq_ref)

    @pl.when(s == 0)
    def _accumulate():
        if ragged:
            # Last tile is partial: lanes >= hw - t*tile hold unspecified edge
            # padding; select (not multiply -- NaN-safe) them to zero.
            lane = lax.broadcasted_iota(jnp.int32, u.shape, 1)
            um = jnp.where(lane < (hw - t * tile), u, 0.0)
        else:
            um = u
        sum_ref[...] += jnp.sum(um, axis=1, keepdims=True)
        sq_ref[...] += jnp.sum(um * um, axis=1, keepdims=True)

    @pl.when(jnp.logical_and(s == 1, t == 0))
    def _stats():
        # Hoisted finalization: computed once per sample, reused by every tile.
        scale, shift = _finalize_scale_shift(sum_ref[...], sq_ref[...], b_ref[...],
                                             g_ref[...], be_ref[...], inv_n, hw)
        scale_ref[...] = scale
        shift_ref[...] = shift

    @pl.when(s == 1)
    def _normalize():
        z = u * scale_ref[...] + shift_ref[...]
        alpha = alpha_ref[0]
        # OOB lanes of a ragged last tile are dropped by the partial writeback.
        o_ref[0] = jnp.where(z >= 0.0, z, alpha * z).astype(o_ref.dtype)


# ---------------------------------------------------------------------------
# Sizing helpers (generation-aware)
# ---------------------------------------------------------------------------

def _vmem_caps():
    """(tiling_budget_bytes, vmem_limit_bytes) derived from the actual chip."""
    try:
        cap = int(pltpu.get_tpu_info().vmem_capacity_bytes)
    except Exception:
        cap = 64 * 1024 * 1024        # conservative fallback (v7x per-TC VMEM)
    budget = max((cap * 45) // 100, 8 * 1024 * 1024)   # ~45% for our blocks
    limit = min((cap * 3) // 4, 100 * 1024 * 1024)     # leave Mosaic headroom
    return budget, limit


def _round_up(v, m):
    return ((v + m - 1) // m) * m


def _cap_tile(cap, max_tile_hw):
    cap = max(128, (int(cap) // 128) * 128)
    if max_tile_hw is not None:
        cap = min(cap, max(128, (int(max_tile_hw) // 128) * 128))
    return cap


def _largest_dividing_tile(hw, cap):
    """Largest multiple-of-128 divisor of hw that is <= cap (0 if none)."""
    best, t = 0, 128
    cap = min(cap, hw)
    while t <= cap:
        if hw % t == 0:
            best = t
        t += 128
    return best


# ---------------------------------------------------------------------------
# Wrapper
# ---------------------------------------------------------------------------

def conv_norm_forward(x_nchw, w, b, gamma, beta, alpha=0.25, *,
                      force_path=None, max_tile_hw=None, out_dtype=None):
    """x_nchw: [B, Cin, H, W]; w: [Cout, Cin] (1x1 conv). Returns [B, Cout, H, W]."""
    B, Cin, H, W = x_nchw.shape
    Cout = w.shape[0]
    HW = H * W
    out_dtype = jnp.dtype(out_dtype) if out_dtype is not None else jnp.dtype(x_nchw.dtype)

    # bf16 I/O path: keep activations in their incoming dtype (halves HBM
    # traffic on this memory-bound kernel); cast the tiny weight to match so
    # the MXU runs its native path; stats / scale / shift stay f32.
    if jnp.dtype(x_nchw.dtype) in (jnp.dtype(jnp.bfloat16), jnp.dtype(jnp.float32)):
        io_dtype = jnp.dtype(x_nchw.dtype)
    else:
        io_dtype = jnp.dtype(jnp.float32)

    x = x_nchw.reshape(B, Cin, HW).astype(io_dtype)     # free reshape, no transpose
    w2 = w.astype(io_dtype)
    b2 = b.reshape(Cout, 1).astype(jnp.float32)
    g2 = gamma.reshape(Cout, 1).astype(jnp.float32)
    be2 = beta.reshape(Cout, 1).astype(jnp.float32)
    a1 = jnp.asarray(alpha, jnp.float32).reshape(1)

    xb = io_dtype.itemsize
    ob = out_dtype.itemsize
    budget, vmem_limit = _vmem_caps()
    slack = 512 * 1024 + 2 * (Cout * Cin * xb + 3 * Cout * 4)
    avail = max(budget - slack, 1 << 20)

    inv_n = 1.0 / float(Cout * HW)

    # ---- path selection --------------------------------------------------
    # per-HW-column VMEM bytes: double-buffered x + double-buffered out +
    # f32 intermediates (u, u*u/z slabs).
    fused_bytes = HW * (2 * Cin * xb + 2 * Cout * ob + 3 * Cout * 4)
    resident_out_bytes = 2 * Cout * HW * ob             # resident out block (x2 buffers)
    cache_y_per_col = 2 * Cin * xb + 2 * Cout * 4
    two_sweep_per_col = 2 * Cin * xb + 2 * Cout * ob + 2 * Cout * 4

    path = force_path
    if path is None:
        if fused_bytes <= avail:
            path = "fused"
        elif HW % 128 == 0 and resident_out_bytes + 128 * cache_y_per_col <= avail:
            path = "cache_y"
        else:
            path = "two_sweep"

    param_specs = [
        pl.BlockSpec((Cout, Cin), lambda *_: (0, 0)),          # w
        pl.BlockSpec((Cout, 1), lambda *_: (0, 0)),            # conv bias
        pl.BlockSpec((Cout, 1), lambda *_: (0, 0)),            # GN gamma
        pl.BlockSpec((Cout, 1), lambda *_: (0, 0)),            # GN beta
        pl.BlockSpec(memory_space=pltpu.MemorySpace.SMEM),     # PReLU alpha scalar
    ]

    matmul_flops = 2 * B * HW * Cin * Cout
    ew_flops = 8 * B * HW * Cout
    io_bytes = x.size * xb + B * Cout * HW * ob + Cout * Cin * xb + 3 * Cout * 4

    if path == "fused":
        out = pl.pallas_call(
            functools.partial(_convnorm_fused_kernel, inv_n=inv_n, hw=HW),
            out_shape=jax.ShapeDtypeStruct((B, Cout, HW), out_dtype),
            grid_spec=pltpu.PrefetchScalarGridSpec(
                num_scalar_prefetch=0,
                grid=(B,),
                in_specs=[pl.BlockSpec((1, Cin, HW), lambda bb: (bb, 0, 0))]
                         + param_specs,
                out_specs=pl.BlockSpec((1, Cout, HW), lambda bb: (bb, 0, 0)),
            ),
            compiler_params=pltpu.CompilerParams(
                dimension_semantics=("parallel",), vmem_limit_bytes=vmem_limit),
            cost_estimate=pl.CostEstimate(
                flops=matmul_flops + ew_flops, transcendentals=B,
                bytes_accessed=io_bytes),
        )(x, w2, b2, g2, be2, a1)

    elif path == "cache_y":
        if HW % 128 != 0:
            raise ValueError("cache_y path requires HW to be a multiple of 128")
        tile_cap = _cap_tile((avail - resident_out_bytes) // cache_y_per_col, max_tile_hw)
        tile = _largest_dividing_tile(HW, tile_cap) or 128
        n_tiles = HW // tile
        out = pl.pallas_call(
            functools.partial(_convnorm_cache_y_kernel, tile=tile, inv_n=inv_n, hw=HW),
            out_shape=jax.ShapeDtypeStruct((B, Cout, HW), out_dtype),
            grid_spec=pltpu.PrefetchScalarGridSpec(
                num_scalar_prefetch=0,
                grid=(B, n_tiles),
                in_specs=[pl.BlockSpec((1, Cin, tile), lambda bb, t: (bb, 0, t))]
                         + param_specs,
                # Output index constant along t -> whole-sample output slab is
                # VMEM-resident; it is fully staged then rewritten in place at
                # the last tile before any writeback can occur (index only
                # changes when bb changes / grid ends).
                out_specs=pl.BlockSpec((1, Cout, HW), lambda bb, t: (bb, 0, 0)),
                scratch_shapes=[pltpu.VMEM((Cout, 1), jnp.float32),
                                pltpu.VMEM((Cout, 1), jnp.float32)],
            ),
            compiler_params=pltpu.CompilerParams(
                dimension_semantics=("parallel", "arbitrary"),
                vmem_limit_bytes=vmem_limit),
            cost_estimate=pl.CostEstimate(
                flops=matmul_flops + ew_flops, transcendentals=B,
                bytes_accessed=io_bytes),
        )(x, w2, b2, g2, be2, a1)

    elif path == "two_sweep":
        tile = min(_round_up(HW, 128), _cap_tile(avail // two_sweep_per_col, max_tile_hw))
        n_tiles = pl.cdiv(HW, tile)
        ragged = (HW % tile) != 0
        out = pl.pallas_call(
            functools.partial(_convnorm_two_sweep_kernel, tile=tile, inv_n=inv_n,
                              hw=HW, ragged=ragged),
            out_shape=jax.ShapeDtypeStruct((B, Cout, HW), out_dtype),
            grid_spec=pltpu.PrefetchScalarGridSpec(
                num_scalar_prefetch=0,
                grid=(B, 2, n_tiles),
                in_specs=[pl.BlockSpec((1, Cin, tile), lambda bb, s, t: (bb, 0, t))]
                         + param_specs,
                # Sweep 0 pins the output index to tile 0 (never written there);
                # sweep 1 writes every tile exactly once.  Correct under the
                # standard sequential grid order: a block is written back only
                # after its (s=1, t) visit fully defines it.
                out_specs=pl.BlockSpec((1, Cout, tile), lambda bb, s, t: (bb, 0, s * t)),
                scratch_shapes=[pltpu.VMEM((Cout, 1), jnp.float32),
                                pltpu.VMEM((Cout, 1), jnp.float32),
                                pltpu.VMEM((Cout, 1), jnp.float32),
                                pltpu.VMEM((Cout, 1), jnp.float32)],
            ),
            compiler_params=pltpu.CompilerParams(
                dimension_semantics=("parallel", "arbitrary", "arbitrary"),
                vmem_limit_bytes=vmem_limit),
            cost_estimate=pl.CostEstimate(
                flops=2 * matmul_flops + ew_flops, transcendentals=B,
                bytes_accessed=io_bytes + x.size * xb),
        )(x, w2, b2, g2, be2, a1)
    else:
        raise ValueError(f"unknown path: {path}")

    return out.reshape(B, Cout, H, W)


# ---------------------------------------------------------------------------
# Pure-JAX reference (PyTorch semantics)
# ---------------------------------------------------------------------------

def reference_forward(x_nchw, w, b, gamma, beta, alpha):
    y = jnp.einsum("oc,bchw->bohw", w, x_nchw) + b[None, :, None, None]
    mean = jnp.mean(y, axis=(1, 2, 3), keepdims=True)
    var = jnp.mean((y - mean) ** 2, axis=(1, 2, 3), keepdims=True)
    y = (y - mean) / jnp.sqrt(var + _EPS)
    y = y * gamma[None, :, None, None] + beta[None, :, None, None]
    return jnp.where(y >= 0, y, alpha * y)


if __name__ == "__main__":
    B, Cin, Cout, H, W = 2, 4, 8, 16, 16

    key = jax.random.PRNGKey(0)
    kx, kw, kb, kg, kbe, kx2 = jax.random.split(key, 6)

    x = jax.random.normal(kx, (B, Cin, H, W), jnp.float32)
    bound = 1.0 / (Cin ** 0.5)
    w = jax.random.uniform(kw, (Cout, Cin), jnp.float32, -bound, bound)
    b = jax.random.uniform(kb, (Cout,), jnp.float32, -bound, bound)
    gamma = 1.0 + 0.1 * jax.random.normal(kg, (Cout,), jnp.float32)
    beta = 0.1 * jax.random.normal(kbe, (Cout,), jnp.float32)
    alpha = 0.25  # nn.PReLU() default (re-created every forward -> always 0.25)

    ref = reference_forward(x, w, b, gamma, beta, alpha)

    # Path A: fused whole-sample (the default at these shapes).
    out = jax.block_until_ready(conv_norm_forward(x, w, b, gamma, beta, alpha))
    assert out.shape == (B, Cout, H, W)
    assert jnp.allclose(out, ref, atol=1e-4, rtol=1e-4), "mismatch (fused path)"

    # Path B: stream-x / cache-y (force 2 tiles of 128) and validate.
    out_b = jax.block_until_ready(
        conv_norm_forward(x, w, b, gamma, beta, alpha,
                          force_path="cache_y", max_tile_hw=128))
    assert jnp.allclose(out_b, ref, atol=1e-4, rtol=1e-4), "mismatch (cache_y path)"

    # Path C: two-sweep with ragged HW (20x20 = 400 -> 4 tiles, masked last tile).
    x2 = jax.random.normal(kx2, (B, Cin, 20, 20), jnp.float32)
    ref2 = reference_forward(x2, w, b, gamma, beta, alpha)
    out_c = jax.block_until_ready(
        conv_norm_forward(x2, w, b, gamma, beta, alpha,
                          force_path="two_sweep", max_tile_hw=128))
    assert jnp.allclose(out_c, ref2, atol=1e-4, rtol=1e-4), "mismatch (two_sweep path)"

    # bf16 I/O smoke test (fused path, bf16 activations/weights, f32 stats).
    out_bf = jax.block_until_ready(
        conv_norm_forward(x.astype(jnp.bfloat16), w, b, gamma, beta, alpha))
    assert jnp.allclose(out_bf.astype(jnp.float32), ref, atol=0.15, rtol=0.05), \
        "mismatch (bf16 path)"

    print("KERNEL_OK")
</pallas_src>

<mosaic_0001>
module attributes {stable_mosaic.version = 11 : i64} {
  func.func @_convnorm_fused_kernel(%arg0: i32, %arg1: memref<1x4x256xf32, #tpu.memory_space<vmem>>, %arg2: memref<8x4xf32, #tpu.memory_space<vmem>>, %arg3: memref<8x1xf32, #tpu.memory_space<vmem>>, %arg4: memref<8x1xf32, #tpu.memory_space<vmem>>, %arg5: memref<8x1xf32, #tpu.memory_space<vmem>>, %arg6: memref<1xf32, #tpu.memory_space<smem>>, %arg7: memref<1x8x256xf32, #tpu.memory_space<vmem>>) attributes {dimension_semantics = [#tpu.dimension_semantics<parallel>], iteration_bounds = array<i64: 2>, scalar_prefetch = 0 : i64, scratch_operands = 0 : i64, tpu.core_type = #tpu.core_type<tc>, window_params = [{transform_indices = @transform_0, window_bounds = array<i64: 1, 4, 256>}, {pipeline_mode = #tpu.pipeline_mode<synchronous>, transform_indices = @transform_1, window_bounds = array<i64: 8, 4>}, {pipeline_mode = #tpu.pipeline_mode<synchronous>, transform_indices = @transform_2, window_bounds = array<i64: 8, 1>}, {pipeline_mode = #tpu.pipeline_mode<synchronous>, transform_indices = @transform_3, window_bounds = array<i64: 8, 1>}, {pipeline_mode = #tpu.pipeline_mode<synchronous>, transform_indices = @transform_4, window_bounds = array<i64: 8, 1>}, {transform_indices = @transform_5, window_bounds = array<i64: 1>}, {transform_indices = @transform_6, window_bounds = array<i64: 1, 8, 256>}]} {
    %c0 = arith.constant 0 : index
    %c0_0 = arith.constant 0 : index
    %0 = vector.load %arg2[%c0, %c0_0] : memref<8x4xf32, #tpu.memory_space<vmem>>, vector<8x4xf32>
    %c0_1 = arith.constant 0 : index
    %c0_2 = arith.constant 0 : index
    %c0_3 = arith.constant 0 : index
    %1 = vector.load %arg1[%c0_1, %c0_2, %c0_3] : memref<1x4x256xf32, #tpu.memory_space<vmem>>, vector<1x4x256xf32>
    %2 = vector.shape_cast %1 : vector<1x4x256xf32> to vector<4x256xf32>
    %cst = arith.constant dense<0.000000e+00> : vector<8x256xf32>
    %3 = tpu.matmul %0, %2, %cst {dimension_numbers = #tpu.dot_dimension_numbers<[1], [0], [0], [1], [0, 0, 1, 1], [], []>} : vector<8x4xf32>, vector<4x256xf32>, vector<8x256xf32> -> vector<8x256xf32>
    %cst_4 = arith.constant dense<0.000000e+00> : vector<8xf32>
    %4 = vector.multi_reduction <add>, %3, %cst_4 [1] : vector<8x256xf32> to vector<8xf32>
    %5 = vector.shape_cast %4 : vector<8xf32> to vector<8x1xf32>
    %6 = arith.mulf %3, %3 : vector<8x256xf32>
    %cst_5 = arith.constant dense<0.000000e+00> : vector<8xf32>
    %7 = vector.multi_reduction <add>, %6, %cst_5 [1] : vector<8x256xf32> to vector<8xf32>
    %8 = vector.shape_cast %7 : vector<8xf32> to vector<8x1xf32>
    %c0_6 = arith.constant 0 : index
    %c0_7 = arith.constant 0 : index
    %9 = vector.load %arg3[%c0_6, %c0_7] : memref<8x1xf32, #tpu.memory_space<vmem>>, vector<8x1xf32>
    %c0_8 = arith.constant 0 : index
    %c0_9 = arith.constant 0 : index
    %10 = vector.load %arg4[%c0_8, %c0_9] : memref<8x1xf32, #tpu.memory_space<vmem>>, vector<8x1xf32>
    %c0_10 = arith.constant 0 : index
    %c0_11 = arith.constant 0 : index
    %11 = vector.load %arg5[%c0_10, %c0_11] : memref<8x1xf32, #tpu.memory_space<vmem>>, vector<8x1xf32>
    %12 = vector.shape_cast %5 : vector<8x1xf32> to vector<1x8x1xf32>
    %cst_12 = arith.constant dense<0.000000e+00> : vector<1xf32>
    %13 = vector.multi_reduction <add>, %12, %cst_12 [1, 2] : vector<1x8x1xf32> to vector<1xf32>
    %14 = vector.shape_cast %13 : vector<1xf32> to vector<1x1x1xf32>
    %15 = vector.extract %14[0, 0, 0] : f32 from vector<1x1x1xf32>
    %16 = vector.shape_cast %9 : vector<8x1xf32> to vector<1x8x1xf32>
    %cst_13 = arith.constant dense<0.000000e+00> : vector<1xf32>
    %17 = vector.multi_reduction <add>, %16, %cst_13 [1, 2] : vector<1x8x1xf32> to vector<1xf32>
    %18 = vector.shape_cast %17 : vector<1xf32> to vector<1x1x1xf32>
    %19 = vector.extract %18[0, 0, 0] : f32 from vector<1x1x1xf32>
    %cst_14 = arith.constant 2.560000e+02 : f32
    %20 = arith.mulf %cst_14, %19 : f32
    %21 = arith.addf %15, %20 : f32
    %22 = vector.shape_cast %8 : vector<8x1xf32> to vector<1x8x1xf32>
    %cst_15 = arith.constant dense<0.000000e+00> : vector<1xf32>
    %23 = vector.multi_reduction <add>, %22, %cst_15 [1, 2] : vector<1x8x1xf32> to vector<1xf32>
    %24 = vector.shape_cast %23 : vector<1xf32> to vector<1x1x1xf32>
    %25 = vector.extract %24[0, 0, 0] : f32 from vector<1x1x1xf32>
    %26 = arith.mulf %9, %5 : vector<8x1xf32>
    %27 = vector.shape_cast %26 : vector<8x1xf32> to vector<1x8x1xf32>
    %cst_16 = arith.constant dense<0.000000e+00> : vector<1xf32>
    %28 = vector.multi_reduction <add>, %27, %cst_16 [1, 2] : vector<1x8x1xf32> to vector<1xf32>
    %29 = vector.shape_cast %28 : vector<1xf32> to vector<1x1x1xf32>
    %30 = vector.extract %29[0, 0, 0] : f32 from vector<1x1x1xf32>
    %cst_17 = arith.constant 2.000000e+00 : f32
    %31 = arith.mulf %cst_17, %30 : f32
    %32 = arith.addf %25, %31 : f32
    %33 = arith.mulf %9, %9 : vector<8x1xf32>
    %34 = vector.shape_cast %33 : vector<8x1xf32> to vector<1x8x1xf32>
    %cst_18 = arith.constant dense<0.000000e+00> : vector<1xf32>
    %35 = vector.multi_reduction <add>, %34, %cst_18 [1, 2] : vector<1x8x1xf32> to vector<1xf32>
    %36 = vector.shape_cast %35 : vector<1xf32> to vector<1x1x1xf32>
    %37 = vector.extract %36[0, 0, 0] : f32 from vector<1x1x1xf32>
    %cst_19 = arith.constant 2.560000e+02 : f32
    %38 = arith.mulf %cst_19, %37 : f32
    %39 = arith.addf %32, %38 : f32
    %cst_20 = arith.constant 4.8828125E-4 : f32
    %40 = arith.mulf %21, %cst_20 : f32
    %cst_21 = arith.constant 4.8828125E-4 : f32
    %41 = arith.mulf %39, %cst_21 : f32
    %42 = arith.mulf %40, %40 : f32
    %43 = arith.subf %41, %42 : f32
    %cst_22 = arith.constant 0.000000e+00 : f32
    %44 = arith.maximumf %43, %cst_22 : f32
    %cst_23 = arith.constant 9.99999997E-7 : f32
    %45 = arith.addf %44, %cst_23 : f32
    %46 = math.rsqrt %45 : f32
    %47 = vector.broadcast %46 : f32 to vector<8x1xf32>
    %48 = arith.mulf %10, %47 : vector<8x1xf32>
    %49 = vector.broadcast %40 : f32 to vector<8x1xf32>
    %50 = arith.subf %9, %49 : vector<8x1xf32>
    %51 = arith.mulf %50, %48 : vector<8x1xf32>
    %52 = arith.addf %11, %51 : vector<8x1xf32>
    %53 = vector.broadcast %48 : vector<8x1xf32> to vector<8x256xf32>
    %54 = arith.mulf %3, %53 : vector<8x256xf32>
    %55 = vector.broadcast %52 : vector<8x1xf32> to vector<8x256xf32>
    %56 = arith.addf %54, %55 : vector<8x256xf32>
    %c0_24 = arith.constant 0 : index
    %57 = memref.load %arg6[%c0_24] : memref<1xf32, #tpu.memory_space<smem>>
    %cst_25 = arith.constant 0.000000e+00 : f32
    %58 = vector.broadcast %cst_25 : f32 to vector<8x256xf32>
    %59 = arith.cmpf oge, %56, %58 : vector<8x256xf32>
    %60 = vector.broadcast %57 : f32 to vector<8x256xf32>
    %61 = arith.mulf %60, %56 : vector<8x256xf32>
    %62 = arith.select %59, %56, %61 : vector<8x256xi1>, vector<8x256xf32>
    %c0_26 = arith.constant 0 : index
    %c0_27 = arith.constant 0 : index
    %c0_28 = arith.constant 0 : index
    %63 = vector.load %arg7[%c0_26, %c0_27, %c0_28] : memref<1x8x256xf32, #tpu.memory_space<vmem>>, vector<1x8x256xf32>
    %64 = vector.shape_cast %63 : vector<1x8x256xf32> to vector<8x256xf32>
    %65 = vector.shape_cast %62 : vector<8x256xf32> to vector<1x8x256xf32>
    tpu.vector_store %arg7[%c0_26, %c0_27, %c0_28], %65 {strides = array<i32>} : memref<1x8x256xf32, #tpu.memory_space<vmem>>, vector<1x8x256xf32>,
    return
  }
  func.func @transform_0(%arg0: i32) -> (i32, i32, i32) {
    %c0_i32 = arith.constant 0 : i32
    %c0_i32_0 = arith.constant 0 : i32
    %c0_i32_1 = arith.constant 0 : i32
    return %arg0, %c0_i32, %c0_i32_0 : i32, i32, i32
  }
  func.func @transform_1(%arg0: i32) -> (i32, i32) {
    %c0_i32 = arith.constant 0 : i32
    %c0_i32_0 = arith.constant 0 : i32
    %c0_i32_1 = arith.constant 0 : i32
    return %c0_i32, %c0_i32_0 : i32, i32
  }
  func.func @transform_2(%arg0: i32) -> (i32, i32) {
    %c0_i32 = arith.constant 0 : i32
    %c0_i32_0 = arith.constant 0 : i32
    %c0_i32_1 = arith.constant 0 : i32
    return %c0_i32, %c0_i32_0 : i32, i32
  }
  func.func @transform_3(%arg0: i32) -> (i32, i32) {
    %c0_i32 = arith.constant 0 : i32
    %c0_i32_0 = arith.constant 0 : i32
    %c0_i32_1 = arith.constant 0 : i32
    return %c0_i32, %c0_i32_0 : i32, i32
  }
  func.func @transform_4(%arg0: i32) -> (i32, i32) {
    %c0_i32 = arith.constant 0 : i32
    %c0_i32_0 = arith.constant 0 : i32
    %c0_i32_1 = arith.constant 0 : i32
    return %c0_i32, %c0_i32_0 : i32, i32
  }
  func.func @transform_5(%arg0: i32) -> i32 {
    %c0_i32 = arith.constant 0 : i32
    %c0_i32_0 = arith.constant 0 : i32
    return %c0_i32 : i32
  }
  func.func @transform_6(%arg0: i32) -> (i32, i32, i32) {
    %c0_i32 = arith.constant 0 : i32
    %c0_i32_0 = arith.constant 0 : i32
    %c0_i32_1 = arith.constant 0 : i32
    return %arg0, %c0_i32, %c0_i32_0 : i32, i32, i32
  }
}

</mosaic_0001>

<bundles_post_ra>
// kernel: tpu_custom_call.1
= control target key start
LH: loop header
LB: loop body
LE: loop exit
PB: predicated region body
PF: predicated region fallthrough
CT: control target
= control target key end

     0   :  { %s801_s0 = inlined_call_operand.vmem [shape: f32[2,4,256], index: 0, kind: input, shape index: {}]   ;;  %s802_s1 = inlined_call_operand.vmem [shape: f32[8,4], index: 1, kind: input, shape index: {}]   ;;  %s803_s2 = inlined_call_operand.vmem [shape: f32[8,1], index: 2, kind: input, shape index: {}]   ;;  %s804_s3 = inlined_call_operand.vmem [shape: f32[8,1], index: 3, kind: input, shape index: {}]   ;;  %s805_s4 = inlined_call_operand.vmem [shape: f32[8,1], index: 4, kind: input, shape index: {}]   ;;  %s806_s5 = inlined_call_operand.<no memory space> [shape: f32[1], index: 5, kind: input, shape index: {}]   ;;  %s807_s6 = inlined_call_operand.hbm [shape: f32[2,8,256], index: 6, kind: output, shape index: {}]  }
   0x1   :  { %808 = sst [smem:[#allocation6_spill]] %s801_s0 }
   0x2   :  { %809 = sst [smem:[#allocation7_spill]] %s802_s1 }
   0x3   :  { %11 = sst [smem:[#allocation2]] %s806_s5 }
   0x4   :  { %12 = vsyncpa [#allocation4], 0 }
   0x5   :  { %14 = vsyncpa [#allocation4 + $0x1], 0  ;;  %s680_s23 = smov 0   ;;  %s682_s24 = smov 0  }
   0x6   :  { %s684_s25 = smov 0   ;;  %s686_s26 = smov 0  }
   0x7 LB: > { %s701_s5 = sadd.s32 4294967295, %s638_s26   ;;  %s500_s27 = sadd.s32 4294967294, %s638_s26   ;;  %s638_s26 = sphi %s686_s26, %s817_s26   ;;  %s634_s25 = sphi %s684_s25, %s816_s25   ;;  %s630_s24 = sphi %s682_s24, %s815_s24   ;;  %s626_s23 = sphi %s680_s23, %s814_s23  }
   0x8   : > { %s705_s28 = sadd.s32 1, %s638_s26   ;;  %s158_s29 = sadd.s32 1, %s634_s25 }
   0x9   : > { %s155_s30 = ssub.s32 %s638_s26, %s705_s28  ;;  %p168_p0 = scmp.ne.s32.totalorder %s634_s25, %s630_s24 }
   0xa   : > { %p156_p1 = scmp.eq.s32.totalorder %s155_s30, 0  ;;  %p169_p2 = scmp.eq.s32.totalorder %s701_s5, 1 }
   0xb   : > { %p174_p3 = scmp.ne.s32.totalorder %s630_s24, %s626_s23  ;;  %p175_p4 = scmp.eq.s32.totalorder %s500_s27, 1 }
   0xc   : > { %s716_s7 = scalar_select %p156_p1, %s634_s25, %s158_s29  }
   0xd   : > { %p718_p5 = por %p169_p2, %p168_p0  ;;  %p722_p6 = por %p175_p4, %p174_p3 }
   0xe   : > { %p503_p7 = scmp.ge.s32.totalorder %s638_s26, 1  ;;  %p216_p8 = scmp.lt.s32.totalorder %s638_s26, 3 }
  0x10   : > { %p217_p9 = pnand %p503_p7, %p216_p8 }
  0x11   : > { %p246_p10 = scmp.lt.s32.totalorder (!%p217_p9), %s701_s5, 1  ;;  %s812_s0 = sld [smem:[#allocation6_spill]] (!%p217_p9) }
  0x12   : > { %220 = sbr.rel (%p217_p9) target bundleno = 687 (0x2af), region = 44  ;;  %s813_s1 = sld [smem:[#allocation7_spill]] (!%p217_p9) }
  0x13   : > { %s640_s18 = smov (!%p217_p9), 0.0  }
  0x17   : > { %s247_s10 = scalar_select %p246_p10, %s701_s5, 1  ;;  %vm261_vm0 = vcmask 1043456   ;;  %vm257_vm1 = vcmask 31744   ;;  %v749_v10 = vld [vmem:[%s803_s2] sm:$0xff]  ;;  %vm317_vm2 = vcmask 7168   ;;  %v641_v63 = vmov 0  }
  0x18   : > { %v251_v1 = vld [vmem:[%s813_s1] sm:$0xff]  ;;  %v363_v11 = vmul.f32 %v749_v10, %v749_v10  ;;  %v328_v15 = vsel %vm317_vm2, %v749_v10, 0.0  ;;  %571 = vset.pattern.permute.xlu1 %v641_v63  ;;  %572 = vset.pattern.permute.xlu2 %v641_v63 }
  0x19   : > { %s516_s11 = sshll.u32 %s247_s10, 3  ;;  %573 = vset.pattern.permute.xlu0 %v641_v63 }
  0x1a   : > { %s250_s14 = scalar_lea.vmem %s812_s0, %s516_s11  ;;  %v364_v12 = vsel %vm317_vm2, %v363_v11, 0.0 }
  0x1b   : > { %v252_v0 = vld [vmem:[%s250_s14] sm:$0xff] }
  0x1c   : > { %254 = vst [vmem:[#allocation1] ss:$2 sm:$0xff] %v252_v0 }
  0x23   : > { %v255_v2 = vld.sshfl [vmem:[#allocation1] sm:$0xff pattern:$0x75316420]  ;;  %v256_v3 = vld.sshfl [vmem:[#allocation1 + $0x8] sm:$0xff pattern:$0x75316420] }
  0x24   : > { %507 = vmatpush.msk.msra.mxu0 %vm261_vm0, %v255_v2  ;;  %509 = vmatpush.msk.msra.mxu1 %vm261_vm0, %v256_v3 }
  0x25   : > { %508 = vmatmul.msk.f32.vlgmr.msra.gmra.mxu0 %vm257_vm1, %v251_v1  ;;  %510 = vmatmul.msk.f32.vlgmr.msra.gmra.mxu1 %vm257_vm1, %v251_v1  ;;  %v315_v1 = vld [vmem:[%s804_s3] sm:$0xff] }
  0xa2   : > { %v736_v4 = vpop.f32.mrf.mxu0  ;;  %v738_v5 = vpop.f32.mrf.mxu1 }
  0xa3   : > { %v306_v6 = vadd.f32 %v738_v5, %v736_v4  ;;  %v309_v7 = vmul.f32 %v736_v4, %v736_v4  ;;  %v310_v8 = vmul.f32 %v738_v5, %v738_v5 }
  0xa5   : > { %307 = vadd.xlane.f32.xlu0 %v306_v6  ;;  %v311_v9 = vadd.f32 %v310_v8, %v309_v7  ;;  %v316_v7 = vld [vmem:[%s805_s4] sm:$0xff] }
  0xad   : > { %312 = vadd.xlane.f32.xlu0 %v311_v9 }
  0xb5   : > { %365 = vadd.xlane.f32.xlu0 %v364_v12 }
 0x118   : > { %v308_v13 = vpop.xlane.xlu0 %307 }
 0x119   : > { %v318_v14 = vsel %vm317_vm2, %v308_v13, 0.0  ;;  %v350_v18 = vmul.f32 %v749_v10, %v308_v13 }
 0x11a   : > { %319 = vadd.xlane.f32.xlu1 %v318_v14 }
 0x11b   : > { %v351_v19 = vsel %vm317_vm2, %v350_v18, 0.0 }
 0x120   : > { %v313_v16 = vpop.xlane.xlu0 %312 }
 0x121   : > { %v340_v17 = vsel %vm317_vm2, %v313_v16, 0.0 }
 0x122   : > { %329 = vadd.xlane.f32.xlu1 %v328_v15  ;;  %341 = vadd.xlane.f32.xlu2 %v340_v17 }
 0x128   : > { %v366_v24 = vpop.xlane.xlu0 %365 }
 0x129   : > { %v367_v28 = vrot.slane %v366_v24, 4 }
 0x12a   : > { %352 = vadd.xlane.f32.xlu2 %v351_v19 }
 0x12b   : > { %v368_v35 = vadd.f32 %v367_v28, %v366_v24 }
 0x12d   : > { %v369_v40 = vrot.slane %v368_v35, 2 }
 0x12f   : > { %v370_v48 = vadd.f32 %v369_v40, %v368_v35 }
 0x131   : > { %v371_v51 = vrot.slane %v370_v48, 1 }
 0x133   : > { %v372_v54 = vadd.f32 %v371_v51, %v370_v48 }
 0x18d   : > { %v320_v20 = vpop.xlane.xlu1 %319 }
 0x18e   : > { %v321_v21 = vrot.slane %v320_v20, 4 }
 0x190   : > { %v322_v22 = vadd.f32 %v321_v21, %v320_v20 }
 0x192   : > { %v323_v23 = vrot.slane %v322_v22, 2 }
 0x194   : > { %v324_v25 = vadd.f32 %v323_v23, %v322_v22 }
 0x195   : > { %v330_v26 = vpop.xlane.xlu1 %329  ;;  %v342_v27 = vpop.xlane.xlu2 %341 }
 0x196   : > { %v331_v29 = vrot.slane %v330_v26, 4  ;;  %v343_v30 = vrot.slane %v342_v27, 4  ;;  %v325_v31 = vrot.slane %v324_v25, 1 }
 0x198   : > { %v332_v32 = vadd.f32 %v331_v29, %v330_v26  ;;  %v344_v33 = vadd.f32 %v343_v30, %v342_v27  ;;  %v326_v34 = vadd.f32 %v325_v31, %v324_v25 }
 0x19a   : > { %v333_v36 = vrot.slane %v332_v32, 2  ;;  %v345_v37 = vrot.slane %v344_v33, 2  ;;  %518 = vpush %v326_v34 }
 0x19c   : > { %v334_v38 = vadd.f32 %v333_v36, %v332_v32  ;;  %v346_v39 = vadd.f32 %v345_v37, %v344_v33 }
 0x19d   : > { %v353_v41 = vpop.xlane.xlu2 %352 }
 0x19e   : > { %v354_v42 = vrot.slane %v353_v41, 4  ;;  %v335_v43 = vrot.slane %v334_v38, 1  ;;  %v347_v44 = vrot.slane %v346_v39, 1 }
 0x1a0   : > { %v355_v45 = vadd.f32 %v354_v42, %v353_v41  ;;  %v336_v46 = vadd.f32 %v335_v43, %v334_v38  ;;  %v348_v47 = vadd.f32 %v347_v44, %v346_v39 }
 0x1a2   : > { %v356_v49 = vrot.slane %v355_v45, 2  ;;  %520 = vpush %v336_v46 }
 0x1a3   : > { %522 = vpush %v348_v47 }
 0x1a4   : > { %v357_v50 = vadd.f32 %v356_v49, %v355_v45 }
 0x1a6   : > { %v358_v52 = vrot.slane %v357_v50, 1 }
 0x1a8   : > { %v359_v53 = vadd.f32 %v358_v52, %v357_v50 }
 0x1aa   : > { %524 = vpush %v359_v53 }
 0x1ab   : > { %526 = vpush %v372_v54 }
 0x1cb   : > { %s519_s19 = spop %518 }
 0x1d3   : > { %s521_s20 = spop %520 }
 0x1d4   : > { %s338_s21 = smul.f32 256.0, %s521_s20  ;;  %s523_s27 = spop %522 }
 0x1d6   : > { %s339_s22 = sadd.f32 %s519_s19, %s338_s21 }
 0x1d8   : > { %s755_s11 = smul.f32 0.00048828125, %s339_s22  ;;  %s414_s22 = sld [smem:[#allocation2]] }
 0x1da   : > { %s378_s15 = smul.f32 %s755_s11, %s755_s11  ;;  %v396_v0 = vstv %s755_s11 }
 0x1db   : > { %s525_s29 = spop %524  ;;  %v397_v6 = vsub.f32 %v749_v10, %v396_v0 }
 0x1dc   : > { %s361_s30 = smul.f32 2.0, %s525_s29  ;;  %s527_s10 = spop %526 }
 0x1dd   : > { %s374_s13 = smul.f32 256.0, %s527_s10 }
 0x1de   : > { %s362_s12 = sadd.f32 %s523_s27, %s361_s30  ;;  %s243_s27 = sand.u32 1, %s630_s24   ;;  %v417_v14 = vstv %s414_s22 }
 0x1df   : > { %s504_s29 = sshll.u32 %s243_s27, 4  ;;  %s517_s30 = sshll.u32 %s701_s5, 4 }
 0x1e0   : > { %s375_s14 = sadd.f32 %s374_s13, %s362_s12  ;;  %s436_s12 = scalar_lea.hbm %s807_s6, %s517_s30 }
 0x1e1   : > { %s245_s13 = scalar_lea.vmem [#allocation3], %s504_s29  ;;  %s425_s5 = scalar_lea.sflag [#allocation4], %s243_s27 }
 0x1e2   : > { %s377_s16 = smul.f32 0.00048828125, %s375_s14  ;;  %s438_s14 = sshll.u32 %s245_s13, 4  ;;  %s439_s14 = int_to_ptr.vmem [resolvable:$true] %s438_s14 }
 0x1e4   : > { %s379_s17 = ssub.f32 %s377_s16, %s378_s15  ;;  %s440_s15 = sshll.u32 %s436_s12, 4  ;;  %s441_s15 = int_to_ptr.hbm [resolvable:$true] %s440_s15 }
 0x1e5   : > { %s590_s16 = sshra.s32 %s441_s15, 4  ;;  %s591_s16 = int_to_ptr.hbm [resolvable:$true] %s590_s16 }
 0x1e6   : > { %s380_s0 = smax.f32 %s640_s18, %s379_s17  ;;  %s592_s17 = scalar_lea.hbm %s591_s16, 16 }
 0x1e7   : > { %s381_s1 = sadd.f32 1e-06, %s380_s0  ;;  %p593_p11 = scmp.ne.s32.totalorder %s591_s16, %s592_s17 }
 0x1e8   : > { %p597_p0 = scmp.lt.s32.totalorder %s591_s16, %s807_s6 }
 0x1e9   : > { %v382_v55 = vstv %s381_s1  ;;  %p594_p12 = pnand %p593_p11, %p718_p5  ;;  %s596_s1 = scalar_lea.hbm %s807_s6, 32 }
 0x1ea   : > { %574 = vrsqrt.f32 %v382_v55  ;;  %vm389_vm4 = vweird.f32 %v382_v55  ;;  %p598_p1 = scmp.lt.s32.totalorder %s596_s1, %s592_s17 }
 0x1eb   : > { %p595_p13 = pneg %p594_p12 }
 0x1ec   : > { %p599_p2 = por %p598_p1, %p597_p0 }
 0x1ee   : > { %p600_p3 = pnand %p599_p2, %p595_p13 }
 0x1f0   : > { %v575_v56 = vpop.eup %574 }
 0x1f1   : > { %v384_v57 = vmul.f32 %v575_v56, %v382_v55  ;;  %vm390_vm3 = vweird.f32 %v575_v56 }
 0x1f2   : > { %vm391_vm5 = vmor %vm389_vm4, %vm390_vm3 }
 0x1f3   : > { %v385_v58 = vmul.f32 %v575_v56, %v384_v57 }
 0x1f5   : > { %v386_v59 = vmul.f32 0.5, %v385_v58 }
 0x1f7   : > { %v387_v60 = vsub.f32 1.5, %v386_v59 }
 0x1f9   : > { %v388_v61 = vmul.f32 %v575_v56, %v387_v60 }
 0x1fb   : > { %v392_v62 = vsel %vm391_vm5, %v575_v56, %v388_v61 }
 0x1fc   : > { %528 = vpush %v392_v62 }
 0x22d   : > { %s529_s19 = spop %528 }
 0x22e   : > { %v394_v2 = vstv %s529_s19 }
 0x22f   : > { %v395_v3 = vmul.f32 %v394_v2, %v315_v1 }
 0x231   : > { %v398_v8 = vmul.f32 %v397_v6, %v395_v3  ;;  %402 = vperm.xlu1 %571, %v395_v3  }
 0x233   : > { %v399_v9 = vadd.f32 %v398_v8, %v316_v7 }
 0x235   : > { %409 = vperm.xlu2 %572, %v399_v9  }
 0x28f   : > { %v410_v10 = vpop.permute.xlu2 %409 }
 0x2a3   : > { %v403_v11 = vpop.permute.xlu1 %402 }
 0x2a4   : > { %v405_v12 = vmul.f32 %v403_v11, %v736_v4  ;;  %v406_v13 = vmul.f32 %v403_v11, %v738_v5 }
 0x2a6   : > { %v412_v15 = vadd.f32 %v410_v10, %v405_v12  ;;  %v413_v16 = vadd.f32 %v410_v10, %v406_v13 }
 0x2a8   : > { %vm415_vm6 = vcmp.ge.f32.partialorder %v412_v15, 0.0  ;;  %vm416_vm7 = vcmp.ge.f32.partialorder %v413_v16, 0.0  ;;  %v418_v17 = vmul.f32 %v417_v14, %v412_v15  ;;  %v419_v18 = vmul.f32 %v417_v14, %v413_v16 }
 0x2aa   : > { %v420_v19 = vsel %vm415_vm6, %v412_v15, %v418_v17  ;;  %v421_v4 = vsel %vm416_vm7, %v413_v16, %v419_v18 }
 0x2ab   : > { %422 = vst [vmem:[%s245_s13] sm:$0xff] %v420_v19 }
 0x2ac   : > { %423 = vst [vmem:[%s245_s13 + $0x8] sm:$0xff] %v421_v4 }
 0x2ad   : > { %603 = shalt.err (!%p600_p3)
}
 0x2ae   : > { %530 = dma.vmem_to_hbm [thread:$0]  (%p718_p5), %s439_s14, 256, %s441_s15, %s425_s5  }
 0x2af PF: > { %p536_p4 = scmp.ge.s32.totalorder %s638_s26, 2  ;;  %s452_s21 = sand.u32 1, %s626_s23  }
 0x2b0   : > { %s453_s22 = scalar_lea.sflag [#allocation4], %s452_s21 }
 0x2b1   : > { %p533_p7 = pnand %p536_p4, %p722_p6 }
 0x2b3   : > { %p534_p8 = pneg %p533_p7 }
 0x2b5   : > { %621 = dma.done.wait (%p534_p8), %s453_s22, 256  }
 0x2b6   : > { %623 = vsyncadd (%p534_p8), %s453_s22, 4294967040  ;;  %p17_p9 = scmp.ge.s32.totalorder %s705_s28, 4   ;;  %s814_s23 = smov %s630_s24 }
 0x2b7   : > { %s815_s24 = smov %s634_s25  ;;  %s816_s25 = smov %s716_s7 }
 0x2b8   : > { %s817_s26 = smov %s705_s28  ;;  %19 = sbr.rel (!%p17_p9) target bundleno = 7 (0x7), region = 79 }
 0x2bd   :  { %459 = vsyncpa [#allocation4], 1 }
 0x2be   :  { %461 = vsyncpa [#allocation4 + $0x1], 1 }

</bundles_post_ra>
